<compile_context>
chip_gen: v6e
topology: v6e:2x2x1
jax: 0.10.0
libtpu: 0.0.40
codegen_flags: <defaults>
</compile_context>

<pallas_src>
import jax
import jax.numpy as jnp
from jax.experimental import pallas as pl
from jax.experimental.pallas import tpu as pltpu


def _concat_av_kernel(xv_ref, xa_ref, o_ref):
    # xv_ref: (B, 1, S_v, F)  -- middle frame only (sliced by the BlockSpec)
    # xa_ref: (B, S_a, F)
    # o_ref : (B, S_v + S_a, F)
    # Single lane-dense store of the concatenated tile.
    o_ref[...] = jnp.concatenate([xv_ref[:, 0], xa_ref[...]], axis=1)


def _video_only_kernel(xv_ref, o_ref):
    # xv_ref: (B, 1, S_v, F) -> o_ref: (B, S_v, F)
    o_ref[...] = xv_ref[:, 0]


def prepare_input(x_video, x_audio=None, *, audio_segments):
    """Pallas equivalent of x_input.forward.

    x_video : (B, F, S_v, K)
    x_audio : (B, F, S_a)   (ignored / may be None if audio_segments == 0)
    returns : (B, F, S_v + S_a) if audio_segments > 0 else (B, F, S_v)
    """
    B, F, S_v, K = x_video.shape
    k_mid = K // 2

    # Lane-dense kernel layout: features on the lane (last) axis, frame axis
    # leading so the BlockSpec can select just the middle frame.
    xv_t = jnp.transpose(x_video, (0, 3, 2, 1))  # (B, K, S_v, F)

    # Block is the whole batch; only frame k_mid is ever brought into VMEM.
    video_spec = pl.BlockSpec((B, 1, S_v, F), lambda i: (0, k_mid, 0, 0))
    compiler_params = pltpu.CompilerParams(
        dimension_semantics=("arbitrary",),
        # vmem_limit_bytes only needs raising if F scales far beyond this size.
    )

    if audio_segments > 0:
        S_a = x_audio.shape[2]
        S_out = S_v + S_a
        xa_t = jnp.transpose(x_audio, (0, 2, 1))  # (B, S_a, F)
        out_t = pl.pallas_call(
            _concat_av_kernel,
            grid_spec=pltpu.PrefetchScalarGridSpec(
                num_scalar_prefetch=0,
                grid=(1,),
                in_specs=[
                    video_spec,
                    pl.BlockSpec((B, S_a, F), lambda i: (0, 0, 0)),
                ],
                out_specs=pl.BlockSpec((B, S_out, F), lambda i: (0, 0, 0)),
            ),
            out_shape=jax.ShapeDtypeStruct((B, S_out, F), x_video.dtype),
            compiler_params=compiler_params,
        )(xv_t, xa_t)
    else:
        # Audio operand fully gated out when audio_segments == 0.
        out_t = pl.pallas_call(
            _video_only_kernel,
            grid_spec=pltpu.PrefetchScalarGridSpec(
                num_scalar_prefetch=0,
                grid=(1,),
                in_specs=[video_spec],
                out_specs=pl.BlockSpec((B, S_v, F), lambda i: (0, 0, 0)),
            ),
            out_shape=jax.ShapeDtypeStruct((B, S_v, F), x_video.dtype),
            compiler_params=compiler_params,
        )(xv_t)

    # Back to the module's [B, F, S_out] contract.
    return jnp.transpose(out_t, (0, 2, 1))


if __name__ == "__main__":
    # args['model'] equivalents (synthetic, deterministic)
    video_segments = 8
    audio_segments = 4

    B, F, K = 2, 128, 5  # batch, features (lane-dense), frames

    key = jax.random.PRNGKey(0)
    kv, ka = jax.random.split(key)
    x_video = jax.random.normal(kv, (B, F, video_segments, K), dtype=jnp.float32)
    x_audio = jax.random.normal(ka, (B, F, audio_segments), dtype=jnp.float32)

    # --- audio + video path ---
    out = prepare_input(x_video, x_audio, audio_segments=audio_segments)
    out = jax.block_until_ready(out)
    ref = jnp.concatenate((x_video[:, :, :, K // 2], x_audio), axis=2)
    assert out.shape == (B, F, video_segments + audio_segments), out.shape
    assert out.dtype == x_video.dtype
    assert jnp.allclose(out, ref), "audio+video mismatch vs reference"

    # --- video-only path (audio_segments == 0) ---
    out_v = prepare_input(x_video, None, audio_segments=0)
    out_v = jax.block_until_ready(out_v)
    ref_v = x_video[:, :, :, K // 2]
    assert out_v.shape == (B, F, video_segments), out_v.shape
    assert jnp.allclose(out_v, ref_v), "video-only mismatch vs reference"

    print("KERNEL_OK")
</pallas_src>

<mosaic_0001>
module attributes {stable_mosaic.version = 11 : i64} {
  func.func @_concat_av_kernel(%arg0: i32, %arg1: memref<2x1x8x128xf32, #tpu.memory_space<vmem>>, %arg2: memref<2x4x128xf32, #tpu.memory_space<vmem>>, %arg3: memref<2x12x128xf32, #tpu.memory_space<vmem>>) attributes {dimension_semantics = [#tpu.dimension_semantics<arbitrary>], iteration_bounds = array<i64: 1>, scalar_prefetch = 0 : i64, scratch_operands = 0 : i64, tpu.core_type = #tpu.core_type<tc>, window_params = [{transform_indices = @transform_0, window_bounds = array<i64: 2, 1, 8, 128>}, {pipeline_mode = #tpu.pipeline_mode<synchronous>, transform_indices = @transform_1, window_bounds = array<i64: 2, 4, 128>}, {pipeline_mode = #tpu.pipeline_mode<synchronous>, transform_indices = @transform_2, window_bounds = array<i64: 2, 12, 128>}]} {
    %c0 = arith.constant 0 : index
    %c0_0 = arith.constant 0 : index
    %c0_1 = arith.constant 0 : index
    %c0_2 = arith.constant 0 : index
    %0 = vector.load %arg1[%c0, %c0_0, %c0_1, %c0_2] : memref<2x1x8x128xf32, #tpu.memory_space<vmem>>, vector<2x1x8x128xf32>
    %1 = vector.shape_cast %0 : vector<2x1x8x128xf32> to vector<2x8x128xf32>
    %c0_3 = arith.constant 0 : index
    %c0_4 = arith.constant 0 : index
    %c0_5 = arith.constant 0 : index
    %2 = vector.load %arg2[%c0_3, %c0_4, %c0_5] : memref<2x4x128xf32, #tpu.memory_space<vmem>>, vector<2x4x128xf32>
    %3 = tpu.concatenate %1, %2 in 1 : vector<2x8x128xf32>, vector<2x4x128xf32> -> vector<2x12x128xf32>
    %c0_6 = arith.constant 0 : index
    %c0_7 = arith.constant 0 : index
    %c0_8 = arith.constant 0 : index
    %4 = vector.load %arg3[%c0_6, %c0_7, %c0_8] : memref<2x12x128xf32, #tpu.memory_space<vmem>>, vector<2x12x128xf32>
    tpu.vector_store %arg3[%c0_6, %c0_7, %c0_8], %3 {strides = array<i32>} : memref<2x12x128xf32, #tpu.memory_space<vmem>>, vector<2x12x128xf32>,
    return
  }
  func.func @transform_0(%arg0: i32) -> (i32, i32, i32, i32) {
    %c0_i32 = arith.constant 0 : i32
    %c2_i32 = arith.constant 2 : i32
    %c0_i32_0 = arith.constant 0 : i32
    %c0_i32_1 = arith.constant 0 : i32
    %c0_i32_2 = arith.constant 0 : i32
    return %c0_i32, %c2_i32, %c0_i32_0, %c0_i32_1 : i32, i32, i32, i32
  }
  func.func @transform_1(%arg0: i32) -> (i32, i32, i32) {
    %c0_i32 = arith.constant 0 : i32
    %c0_i32_0 = arith.constant 0 : i32
    %c0_i32_1 = arith.constant 0 : i32
    %c0_i32_2 = arith.constant 0 : i32
    return %c0_i32, %c0_i32_0, %c0_i32_1 : i32, i32, i32
  }
  func.func @transform_2(%arg0: i32) -> (i32, i32, i32) {
    %c0_i32 = arith.constant 0 : i32
    %c0_i32_0 = arith.constant 0 : i32
    %c0_i32_1 = arith.constant 0 : i32
    %c0_i32_2 = arith.constant 0 : i32
    return %c0_i32, %c0_i32_0, %c0_i32_1 : i32, i32, i32
  }
}

</mosaic_0001>

<bundles_post_ra>
// kernel: tpu_custom_call.1
= control target key start
LH: loop header
LB: loop body
LE: loop exit
PB: predicated region body
PF: predicated region fallthrough
CT: control target
= control target key end

     0   :  { %7 = vsyncpa [#allocation3], 0  ;;  %s148_s0 = inlined_call_operand.hbm [shape: f32[2,5,8,128], index: 0, kind: input, shape index: {}]   ;;  %s149_s1 = inlined_call_operand.hbm [shape: f32[2,4,128], index: 1, kind: input, shape index: {}]   ;;  %s150_s2 = inlined_call_operand.vmem [shape: f32[2,12,128], index: 2, kind: output, shape index: {}]  }
   0x1   :  { %s14_s11 = scalar_lea.hbm %s148_s0, 256 }
   0x2   :  { %8 = vsyncpa [#allocation5], 0  ;;  %s108_s12 = smov [#allocation2]  }
   0x3   :  { %s15_s13 = sshll.u32 %s108_s12, 4  ;;  %s16_s13 = int_to_ptr.vmem [resolvable:$true] %s15_s13 }
   0x4   :  { %s71_s14 = scalar_lea.vmem %s16_s13, 256  ;;  %p76_p1 = scmp.lt.s32.totalorder %s16_s13, %s16_s13 }
   0x5   :  { %p72_p0 = scmp.ne.s32.totalorder %s16_s13, %s71_s14  ;;  %p77_p2 = scmp.lt.s32.totalorder %s71_s14, %s71_s14 }
   0x7   :  { %p78_p3 = por %p77_p2, %p76_p1 }
   0x9   :  { %p79_p4 = pnand %p78_p3, %p72_p0 }
   0xb   :  { %82 = shalt.err (!%p79_p4)
}
   0xc   :  { %s109_s15 = smov 640   ;;  %s110_s16 = smov 128  }
   0xd   :  { %s111_s17 = smov 8   ;;  %s112_s18 = smov [#allocation4]  }
   0xe   :  { %21 = dma.hbm_to_vmem [thread:$0]  %s14_s11, 256, %s16_s13, [#allocation3], %s109_s15, %s110_s16, %s111_s17  }
   0xf   :  { %s27_s19 = sshll.u32 %s112_s18, 4  ;;  %s28_s19 = int_to_ptr.vmem [resolvable:$true] %s27_s19 }
  0x10   :  { %s92_s20 = scalar_lea.vmem %s28_s19, 128  ;;  %p97_p6 = scmp.lt.s32.totalorder %s28_s19, %s28_s19 }
  0x11   :  { %p93_p5 = scmp.ne.s32.totalorder %s28_s19, %s92_s20  ;;  %p98_p7 = scmp.lt.s32.totalorder %s92_s20, %s92_s20 }
  0x13   :  { %p99_p8 = por %p98_p7, %p97_p6 }
  0x15   :  { %p100_p9 = pnand %p99_p8, %p93_p5 }
  0x17   :  { %103 = shalt.err (!%p100_p9)
}
  0x18   :  { %s113_s0 = smov 64   ;;  %s114_s21 = smov 4  }
  0x19   :  { %33 = dma.hbm_to_vmem [thread:$0]  %s149_s1, 128, %s28_s19, [#allocation5], %s113_s0, %s113_s0, %s114_s21  }
  0x1a   :  { %104 = dma.done.wait [#allocation3], 256  }
  0x1b   :  { %105 = vsyncadd [#allocation3], 4294967040 }
  0x1c   :  { %106 = dma.done.wait [#allocation5], 128  }
  0x1d   :  { %107 = vsyncadd [#allocation5], 4294967168  ;;  %v40_v0 = vld [vmem:[#allocation2] sm:$0xff]  ;;  %v42_v1 = vld [vmem:[#allocation4] sm:$0xf] }
  0x1e   :  { %v41_v2 = vld [vmem:[#allocation2 + $0x8] sm:$0xff]  ;;  %44 = vst [vmem:[%s150_s2] sm:$0xff] %v40_v0  ;;  %45 = vst [vmem:[%s150_s2 + $0x8] sm:$0xf] %v42_v1  ;;  %v43_v3 = vld [vmem:[#allocation4 + $0x4] sm:$0xf] }
  0x1f   :  { %46 = vst [vmem:[%s150_s2 + $0x10] sm:$0xff] %v41_v2  ;;  %47 = vst [vmem:[%s150_s2 + $0x18] sm:$0xf] %v43_v3 }
  0x20   :  { %52 = vsyncpa [#allocation3], 1 }
  0x21   :  { %53 = vsyncpa [#allocation5], 1 }

</bundles_post_ra>
